<compile_context>
chip_gen: v7x
topology: tpu7x:2x2x1
jax: 0.10.0
libtpu: 0.0.40
codegen_flags: <defaults>
</compile_context>

<pallas_src>
import functools

import jax
import jax.numpy as jnp
from jax.experimental import pallas as pl
from jax.experimental.pallas import tpu as pltpu

# Minimum padded-batch size at which we force >=2 grid steps (v7x megacore).
_MIN_SPLIT = 1024


def _round_up(x, m):
    return (x + m - 1) // m * m


def _cdiv(a, b):
    return -(-a // b)


def _choose_tiling(B, tile_b):
    """Pick (tile rows, padded batch, #grid steps).

    - padding is spread across steps and bounded by ~8 rows/step,
    - >=2 steps whenever the batch is large enough (v7x megacore sharding).
    """
    B8 = _round_up(max(B, 8), 8)
    n_steps = max(_cdiv(B8, max(tile_b, 8)), 1)
    if n_steps == 1 and B8 >= _MIN_SPLIT:
        n_steps = 2
    tb = _round_up(_cdiv(B8, n_steps), 8)
    Bp = tb * n_steps
    return tb, Bp, n_steps


def mlp_kernel(x_ref, w1_ref, b1_ref, w2_ref, b2_ref, w3_ref, b3_ref, o_ref):
    # Cast x f32 -> bf16 on the VPU right before the MXU feed (no extra HBM pass).
    x_bf = x_ref[...].astype(jnp.bfloat16)
    # Layer 1: (TB, D_in) @ (D_in, H1) + (1, H1), ReLU   (bf16 MXU, f32 acc)
    h1 = jnp.dot(x_bf, w1_ref[...], preferred_element_type=jnp.float32)
    h1 = jnp.maximum(h1 + b1_ref[...], 0.0).astype(jnp.bfloat16)
    # Layer 2: (TB, H1) @ (H1, H2) + (1, H2), ReLU
    h2 = jnp.dot(h1, w2_ref[...], preferred_element_type=jnp.float32)
    h2 = jnp.maximum(h2 + b2_ref[...], 0.0).astype(jnp.bfloat16)
    # Layer 3: (TB, H2) @ (H2, D_out) + (1, D_out) -- narrow output, no padding
    out = jnp.dot(h2, w3_ref[...], preferred_element_type=jnp.float32) + b3_ref[...]
    o_ref[...] = out.astype(o_ref.dtype)


@functools.partial(jax.jit, static_argnames=("tile_b",))
def ml_models_forward(x, params, *, tile_b=4096):
    """x: (B, D_in) float32. params: dict of w1,b1,w2,b2,w3,b3 (f32)."""
    B, D_in = x.shape
    w1, b1 = params["w1"], params["b1"]
    w2, b2 = params["w2"], params["b2"]
    w3, b3 = params["w3"], params["b3"]
    H1 = w1.shape[1]
    H2 = w2.shape[1]
    D_out = w3.shape[1]

    # Weights to bf16 (tiny, one-time); biases / x / output stay f32.
    w1_bf = w1.astype(jnp.bfloat16)
    w2_bf = w2.astype(jnp.bfloat16)
    w3_bf = w3.astype(jnp.bfloat16)
    b1_f = b1.astype(jnp.float32)
    b2_f = b2.astype(jnp.float32)
    b3_f = b3.astype(jnp.float32)

    # Batch tiling: big tiles, minimal padding, >=2 steps for large batches.
    tb, Bp, n_steps = _choose_tiling(B, tile_b)
    x_in = x if Bp == B else jnp.pad(x, ((0, Bp - B), (0, 0)))
    grid = (n_steps,)

    # Advisory cost hint matching the real kernel traffic.
    flops = 2 * Bp * (D_in * H1 + H1 * H2 + H2 * D_out)
    bytes_accessed = (
        Bp * D_in * 4                                  # x (f32) read
        + Bp * D_out * 4                               # output (f32) write
        + (w1_bf.size + w2_bf.size + w3_bf.size) * 2   # weights (bf16)
        + (b1_f.size + b2_f.size + b3_f.size) * 4      # biases (f32)
    )

    out = pl.pallas_call(
        mlp_kernel,
        out_shape=jax.ShapeDtypeStruct((Bp, D_out), jnp.float32),
        grid_spec=pltpu.PrefetchScalarGridSpec(
            num_scalar_prefetch=0,
            grid=grid,
            in_specs=[
                pl.BlockSpec((tb, D_in), lambda i: (i, 0)),
                pl.BlockSpec((D_in, H1), lambda i: (0, 0)),
                pl.BlockSpec((1, H1), lambda i: (0, 0)),
                pl.BlockSpec((H1, H2), lambda i: (0, 0)),
                pl.BlockSpec((1, H2), lambda i: (0, 0)),
                pl.BlockSpec((H2, D_out), lambda i: (0, 0)),
                pl.BlockSpec((1, D_out), lambda i: (0, 0)),
            ],
            out_specs=pl.BlockSpec((tb, D_out), lambda i: (i, 0)),
        ),
        compiler_params=pltpu.CompilerParams(
            dimension_semantics=("parallel",),
        ),
        cost_estimate=pl.CostEstimate(
            flops=flops, transcendentals=0, bytes_accessed=bytes_accessed
        ),
    )(x_in, w1_bf, b1_f, w2_bf, b2_f, w3_bf, b3_f)

    return out[:B, :]


def init_params(key, d_in, h1=128, h2=64, d_out=2):
    """Deterministic init mimicking nn.Linear's U(-1/sqrt(fan_in), 1/sqrt(fan_in))."""
    ks = jax.random.split(key, 6)

    def lin(kw, kb, fan_in, fan_out):
        bound = 1.0 / jnp.sqrt(fan_in)
        w = jax.random.uniform(kw, (fan_in, fan_out), jnp.float32, -bound, bound)
        b = jax.random.uniform(kb, (1, fan_out), jnp.float32, -bound, bound)
        return w, b

    w1, b1 = lin(ks[0], ks[1], d_in, h1)
    w2, b2 = lin(ks[2], ks[3], h1, h2)
    w3, b3 = lin(ks[4], ks[5], h2, d_out)
    return {"w1": w1, "b1": b1, "w2": w2, "b2": b2, "w3": w3, "b3": b3}


def reference_forward(x, p):
    h1 = jnp.maximum(x @ p["w1"] + p["b1"], 0.0)
    h2 = jnp.maximum(h1 @ p["w2"] + p["b2"], 0.0)
    return h2 @ p["w3"] + p["b3"]


if __name__ == "__main__":
    key = jax.random.PRNGKey(0)
    k_x, k_p = jax.random.split(key)

    B, D_in = 8, 32  # small shapes consistent with the module's in_dim arg
    x = jax.random.normal(k_x, (B, D_in), jnp.float32)
    params = init_params(k_p, D_in)

    out = ml_models_forward(x, params)
    out = jax.block_until_ready(out)

    ref = reference_forward(x, params)
    assert out.shape == (B, 2), out.shape
    # bf16 MXU operands -> loosened tolerance vs the f32 reference.
    assert jnp.allclose(out, ref, atol=5e-2, rtol=5e-2), "mismatch vs reference"

    # Second check: ragged batch + multi-step grid (exercises padding path).
    B2 = 200
    x2 = jax.random.normal(jax.random.PRNGKey(1), (B2, D_in), jnp.float32)
    out2 = jax.block_until_ready(ml_models_forward(x2, params, tile_b=64))
    ref2 = reference_forward(x2, params)
    assert out2.shape == (B2, 2), out2.shape
    assert jnp.allclose(out2, ref2, atol=5e-2, rtol=5e-2), "mismatch (ragged batch)"

    print("KERNEL_OK")
</pallas_src>

<mosaic_0001>
module attributes {stable_mosaic.version = 11 : i64} {
  func.func @mlp_kernel(%arg0: i32, %arg1: memref<8x32xf32, #tpu.memory_space<vmem>>, %arg2: memref<32x128xbf16, #tpu.memory_space<vmem>>, %arg3: memref<1x128xf32, #tpu.memory_space<vmem>>, %arg4: memref<128x64xbf16, #tpu.memory_space<vmem>>, %arg5: memref<1x64xf32, #tpu.memory_space<vmem>>, %arg6: memref<64x2xbf16, #tpu.memory_space<vmem>>, %arg7: memref<1x2xf32, #tpu.memory_space<vmem>>, %arg8: memref<8x2xf32, #tpu.memory_space<vmem>>) attributes {dimension_semantics = [#tpu.dimension_semantics<parallel>], iteration_bounds = array<i64: 1>, scalar_prefetch = 0 : i64, scratch_operands = 0 : i64, tpu.core_type = #tpu.core_type<tc>, window_params = [{transform_indices = @transform_0, window_bounds = array<i64: 8, 32>}, {pipeline_mode = #tpu.pipeline_mode<synchronous>, transform_indices = @transform_1, window_bounds = array<i64: 32, 128>}, {pipeline_mode = #tpu.pipeline_mode<synchronous>, transform_indices = @transform_2, window_bounds = array<i64: 1, 128>}, {pipeline_mode = #tpu.pipeline_mode<synchronous>, transform_indices = @transform_3, window_bounds = array<i64: 128, 64>}, {pipeline_mode = #tpu.pipeline_mode<synchronous>, transform_indices = @transform_4, window_bounds = array<i64: 1, 64>}, {pipeline_mode = #tpu.pipeline_mode<synchronous>, transform_indices = @transform_5, window_bounds = array<i64: 64, 2>}, {pipeline_mode = #tpu.pipeline_mode<synchronous>, transform_indices = @transform_6, window_bounds = array<i64: 1, 2>}, {transform_indices = @transform_7, window_bounds = array<i64: 8, 2>}]} {
    %c0 = arith.constant 0 : index
    %c0_0 = arith.constant 0 : index
    %0 = vector.load %arg1[%c0, %c0_0] : memref<8x32xf32, #tpu.memory_space<vmem>>, vector<8x32xf32>
    %1 = arith.truncf %0 : vector<8x32xf32> to vector<8x32xbf16>
    %c0_1 = arith.constant 0 : index
    %c0_2 = arith.constant 0 : index
    %2 = vector.load %arg2[%c0_1, %c0_2] : memref<32x128xbf16, #tpu.memory_space<vmem>>, vector<32x128xbf16>
    %cst = arith.constant dense<0.000000e+00> : vector<8x128xf32>
    %3 = tpu.matmul %1, %2, %cst {dimension_numbers = #tpu.dot_dimension_numbers<[1], [0], [0], [1], [0, 0, 1, 1], [], []>} : vector<8x32xbf16>, vector<32x128xbf16>, vector<8x128xf32> -> vector<8x128xf32>
    %c0_3 = arith.constant 0 : index
    %c0_4 = arith.constant 0 : index
    %4 = vector.load %arg3[%c0_3, %c0_4] : memref<1x128xf32, #tpu.memory_space<vmem>>, vector<1x128xf32>
    %5 = vector.broadcast %4 : vector<1x128xf32> to vector<8x128xf32>
    %6 = arith.addf %3, %5 : vector<8x128xf32>
    %cst_5 = arith.constant 0.000000e+00 : f32
    %7 = vector.broadcast %cst_5 : f32 to vector<8x128xf32>
    %8 = arith.maximumf %6, %7 : vector<8x128xf32>
    %9 = arith.truncf %8 : vector<8x128xf32> to vector<8x128xbf16>
    %c0_6 = arith.constant 0 : index
    %c0_7 = arith.constant 0 : index
    %10 = vector.load %arg4[%c0_6, %c0_7] : memref<128x64xbf16, #tpu.memory_space<vmem>>, vector<128x64xbf16>
    %cst_8 = arith.constant dense<0.000000e+00> : vector<8x64xf32>
    %11 = tpu.matmul %9, %10, %cst_8 {dimension_numbers = #tpu.dot_dimension_numbers<[1], [0], [0], [1], [0, 0, 1, 1], [], []>} : vector<8x128xbf16>, vector<128x64xbf16>, vector<8x64xf32> -> vector<8x64xf32>
    %c0_9 = arith.constant 0 : index
    %c0_10 = arith.constant 0 : index
    %12 = vector.load %arg5[%c0_9, %c0_10] : memref<1x64xf32, #tpu.memory_space<vmem>>, vector<1x64xf32>
    %13 = vector.broadcast %12 : vector<1x64xf32> to vector<8x64xf32>
    %14 = arith.addf %11, %13 : vector<8x64xf32>
    %cst_11 = arith.constant 0.000000e+00 : f32
    %15 = vector.broadcast %cst_11 : f32 to vector<8x64xf32>
    %16 = arith.maximumf %14, %15 : vector<8x64xf32>
    %17 = arith.truncf %16 : vector<8x64xf32> to vector<8x64xbf16>
    %c0_12 = arith.constant 0 : index
    %c0_13 = arith.constant 0 : index
    %18 = vector.load %arg6[%c0_12, %c0_13] : memref<64x2xbf16, #tpu.memory_space<vmem>>, vector<64x2xbf16>
    %cst_14 = arith.constant dense<0.000000e+00> : vector<8x2xf32>
    %19 = tpu.matmul %17, %18, %cst_14 {dimension_numbers = #tpu.dot_dimension_numbers<[1], [0], [0], [1], [0, 0, 1, 1], [], []>} : vector<8x64xbf16>, vector<64x2xbf16>, vector<8x2xf32> -> vector<8x2xf32>
    %c0_15 = arith.constant 0 : index
    %c0_16 = arith.constant 0 : index
    %20 = vector.load %arg7[%c0_15, %c0_16] : memref<1x2xf32, #tpu.memory_space<vmem>>, vector<1x2xf32>
    %21 = vector.broadcast %20 : vector<1x2xf32> to vector<8x2xf32>
    %22 = arith.addf %19, %21 : vector<8x2xf32>
    %c0_17 = arith.constant 0 : index
    %c0_18 = arith.constant 0 : index
    %23 = vector.load %arg8[%c0_17, %c0_18] : memref<8x2xf32, #tpu.memory_space<vmem>>, vector<8x2xf32>
    tpu.vector_store %arg8[%c0_17, %c0_18], %22 {strides = array<i32>} : memref<8x2xf32, #tpu.memory_space<vmem>>, vector<8x2xf32>,
    return
  }
  func.func @transform_0(%arg0: i32) -> (i32, i32) {
    %c0_i32 = arith.constant 0 : i32
    %c0_i32_0 = arith.constant 0 : i32
    return %arg0, %c0_i32 : i32, i32
  }
  func.func @transform_1(%arg0: i32) -> (i32, i32) {
    %c0_i32 = arith.constant 0 : i32
    %c0_i32_0 = arith.constant 0 : i32
    %c0_i32_1 = arith.constant 0 : i32
    return %c0_i32, %c0_i32_0 : i32, i32
  }
  func.func @transform_2(%arg0: i32) -> (i32, i32) {
    %c0_i32 = arith.constant 0 : i32
    %c0_i32_0 = arith.constant 0 : i32
    %c0_i32_1 = arith.constant 0 : i32
    return %c0_i32, %c0_i32_0 : i32, i32
  }
  func.func @transform_3(%arg0: i32) -> (i32, i32) {
    %c0_i32 = arith.constant 0 : i32
    %c0_i32_0 = arith.constant 0 : i32
    %c0_i32_1 = arith.constant 0 : i32
    return %c0_i32, %c0_i32_0 : i32, i32
  }
  func.func @transform_4(%arg0: i32) -> (i32, i32) {
    %c0_i32 = arith.constant 0 : i32
    %c0_i32_0 = arith.constant 0 : i32
    %c0_i32_1 = arith.constant 0 : i32
    return %c0_i32, %c0_i32_0 : i32, i32
  }
  func.func @transform_5(%arg0: i32) -> (i32, i32) {
    %c0_i32 = arith.constant 0 : i32
    %c0_i32_0 = arith.constant 0 : i32
    %c0_i32_1 = arith.constant 0 : i32
    return %c0_i32, %c0_i32_0 : i32, i32
  }
  func.func @transform_6(%arg0: i32) -> (i32, i32) {
    %c0_i32 = arith.constant 0 : i32
    %c0_i32_0 = arith.constant 0 : i32
    %c0_i32_1 = arith.constant 0 : i32
    return %c0_i32, %c0_i32_0 : i32, i32
  }
  func.func @transform_7(%arg0: i32) -> (i32, i32) {
    %c0_i32 = arith.constant 0 : i32
    %c0_i32_0 = arith.constant 0 : i32
    return %arg0, %c0_i32 : i32, i32
  }
}

</mosaic_0001>

<bundles_post_ra>
// kernel: ml_models_forward.1
= control target key start
LH: loop header
LB: loop body
LE: loop exit
PB: predicated region body
PF: predicated region fallthrough
CT: control target
= control target key end

     0   :  { %v392_v0 = vmov 0.0   ;;  %vm393_vm0 = vmmov 0   ;;  %vm52_vm1 = vcmask 261120   ;;  %vm250_vm2 = vcmask 523264   ;;  %s494_s1 = inlined_call_operand.vmem [shape: bf16[32,128], index: 1, kind: input, shape index: {}]   ;;  %s495_s0 = inlined_call_operand.vmem [shape: f32[8,32], index: 0, kind: input, shape index: {}]   ;;  %s496_s3 = inlined_call_operand.vmem [shape: bf16[128,64], index: 3, kind: input, shape index: {}]   ;;  %s497_s5 = inlined_call_operand.vmem [shape: bf16[64,2], index: 5, kind: input, shape index: {}]   ;;  %s498_s2 = inlined_call_operand.vmem [shape: f32[1,128], index: 2, kind: input, shape index: {}]   ;;  %s499_s4 = inlined_call_operand.vmem [shape: f32[1,64], index: 4, kind: input, shape index: {}]   ;;  %s500_s6 = inlined_call_operand.vmem [shape: f32[1,2], index: 6, kind: input, shape index: {}]   ;;  %s501_s7 = inlined_call_operand.vmem [shape: f32[8,2], index: 7, kind: output, shape index: {}]  }
   0x1   :  { %336 = vmatprep.subr.bf16.mxu0 %v392_v0  ;;  %v378_v1 = vld [vmem:[%s494_s1] sm:$0xff]   ;;  %340 = vmatprep.mubr.msk.bf16.mxu0 %vm393_vm0, %v392_v0  ;;  %v379_v2 = vld [vmem:[%s494_s1 + $0x8] sm:$0xff]   ;;  %v382_v7 = vld [vmem:[%s496_s3 + $0x10] sm:$0xff]   ;;  %vm294_vm3 = vcmask 15360  }
   0x2   :  { %344 = vmatprep.subr.bf16.mxu1 %v392_v0  ;;  %360 = vmatprep.mubr.msk.bf16.mxu1 %vm393_vm0, %v392_v0  ;;  %v27_v3 = vld [vmem:[%s495_s0] sm:$0xff]  ;;  %v381_v6 = vld [vmem:[%s496_s3 + $0x8] sm:$0xff]   ;;  %v383_v8 = vld [vmem:[%s496_s3 + $0x18] sm:$0xff]  }
   0x3   :  { %337 = vmatpush3.bf16.msra.mxu0 %v378_v1  ;;  %v380_v4 = vld [vmem:[%s496_s3] sm:$0xff]   ;;  %v28_v5 = vpack.c.bf16 %v27_v3, %v27_v3  ;;  %v385_v10 = vld [vmem:[%s496_s3 + $0x28] sm:$0xff]   ;;  %v386_v11 = vld [vmem:[%s496_s3 + $0x30] sm:$0xff]  }
   0x4   :  { %338 = vmatprep.subr.bf16.mxu0 %v392_v0  ;;  %345 = vmatpush3.bf16.msra.mxu1 %v380_v4  ;;  %v384_v9 = vld [vmem:[%s496_s3 + $0x20] sm:$0xff]   ;;  %v387_v12 = vld [vmem:[%s496_s3 + $0x38] sm:$0xff]   ;;  %v389_v14 = vld [vmem:[%s497_s5 + $0x8] sm:$0xff]  }
   0x5   :  { %346 = vmatprep.subr.bf16.mxu1 %v392_v0  ;;  %v388_v13 = vld [vmem:[%s497_s5] sm:$0xff]   ;;  %v390_v23 = vld [vmem:[%s497_s5 + $0x10] sm:$0xff]   ;;  %v391_v24 = vld [vmem:[%s497_s5 + $0x18] sm:$0xff]  }
   0x6   :  { %v300_v15 = vld [vmem:[%s498_s2] ss:$0 sm:$0xff] }
   0x7   :  { %339 = vmatpush3.bf16.msra.mxu0 %v379_v2  ;;  %v304_v25 = vld [vmem:[%s499_s4] ss:$0 sm:$0xff] }
   0x8   :  { %364 = vmatprep.subr.bf16.mxu0 %v392_v0  ;;  %347 = vmatpush3.bf16.msra.mxu1 %v381_v6  ;;  %v313_v33 = vld [vmem:[%s500_s6] ss:$0 sm:$0xff] }
   0x9   :  { %348 = vmatprep.subr.bf16.mxu1 %v392_v0 }
   0xa   :  { %341 = vmatmul.mubr.msk.bf16.vlgmr.msra.gmra.mrb[0].mxu0 %vm52_vm1, %v28_v5 }
   0xb   :  { %372 = vmatprep.mubr.msk.bf16.mxu0 %vm393_vm0, %v392_v0  ;;  %365 = vmatpush3.bf16.msra.mxu0 %v388_v13 }
   0xc   :  { %349 = vmatpush3.bf16.msra.mxu1 %v382_v7  ;;  %366 = vmatprep.subr.bf16.mxu0 %v392_v0 }
   0xd   :  { %350 = vmatprep.subr.bf16.mxu1 %v392_v0 }
   0xf   :  { %367 = vmatpush3.bf16.msra.mxu0 %v389_v14 }
  0x10   :  { %351 = vmatpush3.bf16.msra.mxu1 %v383_v8  ;;  %368 = vmatprep.subr.bf16.mxu0 %v392_v0 }
  0x11   :  { %352 = vmatprep.subr.bf16.mxu1 %v392_v0 }
  0x13   :  { %369 = vmatpush3.bf16.msra.mxu0 %v390_v23 }
  0x14   :  { %353 = vmatpush3.bf16.msra.mxu1 %v384_v9  ;;  %370 = vmatprep.subr.bf16.mxu0 %v392_v0 }
  0x15   :  { %354 = vmatprep.subr.bf16.mxu1 %v392_v0 }
  0x17   :  { %371 = vmatpush3.bf16.msra.mxu0 %v391_v24 }
  0x18   :  { %355 = vmatpush3.bf16.msra.mxu1 %v385_v10 }
  0x19   :  { %356 = vmatprep.subr.bf16.mxu1 %v392_v0 }
  0x1c   :  { %357 = vmatpush3.bf16.msra.mxu1 %v386_v11 }
  0x1d   :  { %358 = vmatprep.subr.bf16.mxu1 %v392_v0 }
  0x20   :  { %359 = vmatpush3.bf16.msra.mxu1 %v387_v12 }
  0xdd   :  { %v90_v16 = vpop.f32.mrb[0].mxu0 }
  0xde   :  { %v91_v17 = vadd.f32 %v300_v15, %v90_v16  ;;  %v342_v18 = vpop.f32.mrb[1].mxu0 }
  0xdf   :  { %v93_v19 = vpop.f32.mrb[2].mxu0 }
  0xe0   :  { %v96_v20 = vmax.f32 %v91_v17, 0.0  ;;  %v343_v21 = vpop.f32.mrb[3].mxu0 }
  0xe2   :  { %v97_v22 = vpack.c.bf16 %v96_v20, %v96_v20 }
  0xe4   :  { %361 = vmatmul.mubr.bf16.vlgmr.msra.gmra.mrb[0].mxu1 %v97_v22 }
 0x1b7   :  { %v203_v26 = vpop.f32.mrb[0].mxu1 }
 0x1b8   :  { %v204_v27 = vadd.f32 %v304_v25, %v203_v26  ;;  %v362_v28 = vpop.f32.mrb[1].mxu1 }
 0x1b9   :  { %v206_v29 = vpop.f32.mrb[2].mxu1 }
 0x1ba   :  { %v209_v30 = vmax.f32 %v204_v27, 0.0  ;;  %v363_v31 = vpop.f32.mrb[3].mxu1 }
 0x1bc   :  { %v210_v32 = vpack.c.bf16 %v209_v30, %v209_v30 }
 0x1be   :  { %373 = vmatmul.mubr.msk.bf16.vlgmr.msra.gmra.mrb[4].mxu0 %vm250_vm2, %v210_v32 }
 0x291   :  { %v288_v34 = vpop.f32.mrb[4].mxu0 }
 0x292   :  { %v289_v35 = vadd.f32 %v313_v33, %v288_v34  ;;  %v374_v36 = vpop.f32.mrb[5].mxu0 }
 0x293   :  { %v291_v37 = vpop.f32.mrb[6].mxu0 }
 0x294   :  { %295 = vst.msk [vmem:[%s501_s7] sm:$0xff] %vm294_vm3, %v289_v35  ;;  %v375_v38 = vpop.f32.mrb[7].mxu0 }

</bundles_post_ra>
